<compile_context>
chip_gen: v5e
topology: v5e:2x2
jax: 0.10.0
libtpu: 0.0.40
codegen_flags: <defaults>
</compile_context>

<pallas_src>
import functools

import jax
import jax.numpy as jnp
from jax import lax
from jax.experimental import pallas as pl
from jax.experimental.pallas import tpu as pltpu


def rnn_seq_kernel(x_ref, h0_ref, wx_ref, wh_ref, b_ref, fused_ref, h_scratch,
                   *, hidden_size):
    """One grid step = one RNN timestep for one batch block.

    x_ref     : (1, bb, I)    input at timestep t                 (streamed)
    h0_ref    : (bb, H)       initial hidden                      (resident per batch block)
    wx_ref    : (I, H+O)      fused [i2h|i2o] weight, input rows  (resident in VMEM)
    wh_ref    : (H, H+O)      fused weight, hidden rows           (resident in VMEM)
    b_ref     : (1, H+O)      fused bias [bh|bo]                  (resident in VMEM)
    fused_ref : (1, bb, H+O)  per-step output slab: [new_hidden | log_softmax(logits)]
    h_scratch : (bb, H) f32   hidden state carried across timesteps in VMEM scratch
    """
    t = pl.program_id(1)

    @pl.when(t == 0)
    def _():
        h_scratch[...] = h0_ref[...].astype(jnp.float32)

    x = x_ref[0]                 # (bb, I)
    h = h_scratch[...]           # (bb, H) f32

    # Single fused matmul: [i2h | i2o](cat(x, h)) == x @ Wx + h @ Wh + b   (MXU, f32 acc)
    fused = (jnp.dot(x, wx_ref[...], preferred_element_type=jnp.float32)
             + jnp.dot(h, wh_ref[...], preferred_element_type=jnp.float32)
             + b_ref[...].astype(jnp.float32))          # (bb, H+O)

    H = hidden_size
    new_h = fused[:, :H]         # i2h(combined)
    logits = fused[:, H:]        # i2o(combined)

    # Numerically stable log_softmax over the O output lanes only.
    m = jnp.max(logits, axis=-1, keepdims=True)
    lse = m + jnp.log(jnp.sum(jnp.exp(logits - m), axis=-1, keepdims=True))

    # One lane-fused store: keep hidden lanes as-is, subtract lse from logit lanes.
    lane = lax.broadcasted_iota(jnp.int32, fused.shape, 1)
    result = jnp.where(lane >= H, fused - lse, fused)

    h_scratch[...] = new_h
    fused_ref[0] = result.astype(fused_ref.dtype)


@functools.partial(jax.jit, static_argnames=("batch_blocks",))
def rnn_seq_forward(xs, h0, wx, whh, b, *, batch_blocks=1):
    """Run the RNN cell over a whole sequence in a single pallas_call.

    xs  : (T, B, I)      inputs for every timestep
    h0  : (B, H)         initial hidden state
    wx  : (I, H+O)       fused weight, input rows
    whh : (H, H+O)       fused weight, hidden rows
    b   : (H+O,) / (1, H+O)  fused bias

    Returns (outputs, hiddens): (T, B, O) per-step log-softmax, (T, B, H) per-step hidden.
    """
    T, B, I = xs.shape
    H = whh.shape[0]
    HO = wx.shape[1]
    b = b.reshape(1, HO)

    assert B % batch_blocks == 0, "batch must divide evenly into batch blocks"
    bb = B // batch_blocks

    kernel = functools.partial(rnn_seq_kernel, hidden_size=H)

    fused = pl.pallas_call(
        kernel,
        out_shape=jax.ShapeDtypeStruct((T, B, HO), xs.dtype),
        grid_spec=pltpu.PrefetchScalarGridSpec(
            num_scalar_prefetch=0,
            grid=(batch_blocks, T),
            in_specs=[
                pl.BlockSpec((1, bb, I), lambda bi, t: (t, bi, 0)),   # x[t]   (streamed)
                pl.BlockSpec((bb, H),    lambda bi, t: (bi, 0)),      # h0     (per batch block)
                pl.BlockSpec((I, HO),    lambda bi, t: (0, 0)),       # Wx     (resident)
                pl.BlockSpec((H, HO),    lambda bi, t: (0, 0)),       # Wh     (resident)
                pl.BlockSpec((1, HO),    lambda bi, t: (0, 0)),       # bias   (resident)
            ],
            out_specs=pl.BlockSpec((1, bb, HO), lambda bi, t: (t, bi, 0)),
            scratch_shapes=[pltpu.VMEM((bb, H), jnp.float32)],        # hidden carry
        ),
        compiler_params=pltpu.CompilerParams(
            dimension_semantics=("parallel", "arbitrary")),           # batch parallel (v7x 2 TCs),
    )(xs, h0, wx, whh, b)                                             # time axis sequential

    hiddens = fused[:, :, :H]
    outputs = fused[:, :, H:]
    return outputs, hiddens


def rnn_forward(x, hidden, wx, whh, b):
    """Exact equivalent of RNN.forward(input, hidden) -> (log_softmax_output, new_hidden)."""
    outputs, hiddens = rnn_seq_forward(x[None], hidden, wx, whh, b)
    return outputs[0], hiddens[0]


def init_params(key, input_size, hidden_size, output_size, dtype=jnp.float32):
    """Deterministic init mimicking torch.nn.Linear (uniform +/- 1/sqrt(fan_in)).
    Weights stored (in_features, out_features) so the math is x @ W + b."""
    C = input_size + hidden_size
    k1, k2, k3, k4 = jax.random.split(key, 4)
    bound = 1.0 / jnp.sqrt(jnp.float32(C))
    wh = jax.random.uniform(k1, (C, hidden_size), dtype, -bound, bound)
    bh = jax.random.uniform(k2, (hidden_size,), dtype, -bound, bound)
    wo = jax.random.uniform(k3, (C, output_size), dtype, -bound, bound)
    bo = jax.random.uniform(k4, (output_size,), dtype, -bound, bound)
    return wh, bh, wo, bo


def pack_params(wh, bh, wo, bo, input_size):
    """Fuse i2h/i2o into one (C, H+O) weight and split its rows into input/hidden parts
    so the kernel never needs a host-side concat(input, hidden)."""
    w = jnp.concatenate([wh, wo], axis=1)          # (C, H+O)
    b = jnp.concatenate([bh, bo])[None, :]         # (1, H+O)
    return w[:input_size], w[input_size:], b       # (I, H+O), (H, H+O), (1, H+O)


if __name__ == "__main__":
    input_size, hidden_size, output_size = 16, 32, 8
    batch, seq_len = 2, 8

    key = jax.random.PRNGKey(0)
    kx, kp = jax.random.split(key)

    xs = jax.random.normal(kx, (seq_len, batch, input_size), jnp.float32)
    h0 = jnp.zeros((batch, hidden_size), jnp.float32)   # initHidden, broadcast over batch

    wh, bh, wo, bo = init_params(kp, input_size, hidden_size, output_size)
    wx, whh, b = pack_params(wh, bh, wo, bo, input_size)

    # fused sequence kernel (the main optimized path)
    outs, hids = rnn_seq_forward(xs, h0, wx, whh, b)
    jax.block_until_ready((outs, hids))

    # reference: plain-JAX step-by-step loop matching the torch module exactly
    h = h0
    ref_outs, ref_hids = [], []
    for t in range(seq_len):
        combined = jnp.concatenate([xs[t], h], axis=1)
        h = combined @ wh + bh
        ref_hids.append(h)
        ref_outs.append(jax.nn.log_softmax(combined @ wo + bo, axis=1))
    ref_outs = jnp.stack(ref_outs)
    ref_hids = jnp.stack(ref_hids)

    assert jnp.allclose(outs, ref_outs, atol=1e-4), "sequence output mismatch"
    assert jnp.allclose(hids, ref_hids, atol=1e-4), "sequence hidden mismatch"

    # single-step API: exact RNN.forward(input, hidden) semantics
    out1, h1 = rnn_forward(xs[0], h0, wx, whh, b)
    jax.block_until_ready((out1, h1))
    assert jnp.allclose(out1, ref_outs[0], atol=1e-4), "single-step output mismatch"
    assert jnp.allclose(h1, ref_hids[0], atol=1e-4), "single-step hidden mismatch"

    print("KERNEL_OK")
</pallas_src>

<mosaic_0001>
module attributes {stable_mosaic.version = 11 : i64} {
  func.func @rnn_seq_kernel(%arg0: i32, %arg1: i32, %arg2: memref<1x2x16xf32, #tpu.memory_space<vmem>>, %arg3: memref<2x32xf32, #tpu.memory_space<vmem>>, %arg4: memref<16x40xf32, #tpu.memory_space<vmem>>, %arg5: memref<32x40xf32, #tpu.memory_space<vmem>>, %arg6: memref<1x40xf32, #tpu.memory_space<vmem>>, %arg7: memref<1x2x40xf32, #tpu.memory_space<vmem>>, %arg8: memref<2x32xf32, #tpu.memory_space<vmem>>) attributes {dimension_semantics = [#tpu.dimension_semantics<parallel>, #tpu.dimension_semantics<arbitrary>], iteration_bounds = array<i64: 1, 8>, scalar_prefetch = 0 : i64, scratch_operands = 1 : i64, tpu.core_type = #tpu.core_type<tc>, window_params = [{transform_indices = @transform_0, window_bounds = array<i64: 1, 2, 16>}, {transform_indices = @transform_1, window_bounds = array<i64: 2, 32>}, {pipeline_mode = #tpu.pipeline_mode<synchronous>, transform_indices = @transform_2, window_bounds = array<i64: 16, 40>}, {pipeline_mode = #tpu.pipeline_mode<synchronous>, transform_indices = @transform_3, window_bounds = array<i64: 32, 40>}, {pipeline_mode = #tpu.pipeline_mode<synchronous>, transform_indices = @transform_4, window_bounds = array<i64: 1, 40>}, {transform_indices = @transform_5, window_bounds = array<i64: 1, 2, 40>}]} {
    %c0_i32 = arith.constant 0 : i32
    %0 = arith.cmpi eq, %arg1, %c0_i32 : i32
    %1 = arith.extui %0 : i1 to i32
    %c0_i32_0 = arith.constant 0 : i32
    %2 = arith.cmpi ne, %1, %c0_i32_0 : i32
    scf.if %2 {
      %c0_19 = arith.constant 0 : index
      %c0_20 = arith.constant 0 : index
      %35 = vector.load %arg3[%c0_19, %c0_20] : memref<2x32xf32, #tpu.memory_space<vmem>>, vector<2x32xf32>
      %c0_21 = arith.constant 0 : index
      %c0_22 = arith.constant 0 : index
      %36 = vector.load %arg8[%c0_21, %c0_22] : memref<2x32xf32, #tpu.memory_space<vmem>>, vector<2x32xf32>
      tpu.vector_store %arg8[%c0_21, %c0_22], %35 {strides = array<i32>} : memref<2x32xf32, #tpu.memory_space<vmem>>, vector<2x32xf32>,
    } else {
    }
    %c0 = arith.constant 0 : index
    %c0_1 = arith.constant 0 : index
    %c0_2 = arith.constant 0 : index
    %3 = vector.load %arg2[%c0, %c0_1, %c0_2] : memref<1x2x16xf32, #tpu.memory_space<vmem>>, vector<1x2x16xf32>
    %4 = vector.shape_cast %3 : vector<1x2x16xf32> to vector<2x16xf32>
    %c0_3 = arith.constant 0 : index
    %c0_4 = arith.constant 0 : index
    %5 = vector.load %arg8[%c0_3, %c0_4] : memref<2x32xf32, #tpu.memory_space<vmem>>, vector<2x32xf32>
    %c0_5 = arith.constant 0 : index
    %c0_6 = arith.constant 0 : index
    %6 = vector.load %arg4[%c0_5, %c0_6] : memref<16x40xf32, #tpu.memory_space<vmem>>, vector<16x40xf32>
    %cst = arith.constant dense<0.000000e+00> : vector<2x40xf32>
    %7 = tpu.matmul %4, %6, %cst {dimension_numbers = #tpu.dot_dimension_numbers<[1], [0], [0], [1], [0, 0, 1, 1], [], []>} : vector<2x16xf32>, vector<16x40xf32>, vector<2x40xf32> -> vector<2x40xf32>
    %c0_7 = arith.constant 0 : index
    %c0_8 = arith.constant 0 : index
    %8 = vector.load %arg5[%c0_7, %c0_8] : memref<32x40xf32, #tpu.memory_space<vmem>>, vector<32x40xf32>
    %cst_9 = arith.constant dense<0.000000e+00> : vector<2x40xf32>
    %9 = tpu.matmul %5, %8, %cst_9 {dimension_numbers = #tpu.dot_dimension_numbers<[1], [0], [0], [1], [0, 0, 1, 1], [], []>} : vector<2x32xf32>, vector<32x40xf32>, vector<2x40xf32> -> vector<2x40xf32>
    %10 = arith.addf %7, %9 : vector<2x40xf32>
    %c0_10 = arith.constant 0 : index
    %c0_11 = arith.constant 0 : index
    %11 = vector.load %arg6[%c0_10, %c0_11] : memref<1x40xf32, #tpu.memory_space<vmem>>, vector<1x40xf32>
    %12 = vector.broadcast %11 : vector<1x40xf32> to vector<2x40xf32>
    %13 = arith.addf %10, %12 : vector<2x40xf32>
    %14 = vector.extract_strided_slice %13 {offsets = [0, 0], sizes = [2, 32], strides = [1, 1]} : vector<2x40xf32> to vector<2x32xf32>
    %15 = vector.extract_strided_slice %13 {offsets = [0, 32], sizes = [2, 8], strides = [1, 1]} : vector<2x40xf32> to vector<2x8xf32>
    %cst_12 = arith.constant dense<0xFF800000> : vector<2xf32>
    %16 = vector.multi_reduction <maximumf>, %15, %cst_12 [1] : vector<2x8xf32> to vector<2xf32>
    %17 = vector.shape_cast %16 : vector<2xf32> to vector<2x1xf32>
    %18 = vector.broadcast %17 : vector<2x1xf32> to vector<2x8xf32>
    %19 = arith.subf %15, %18 : vector<2x8xf32>
    %20 = math.exp %19 : vector<2x8xf32>
    %cst_13 = arith.constant dense<0.000000e+00> : vector<2xf32>
    %21 = vector.multi_reduction <add>, %20, %cst_13 [1] : vector<2x8xf32> to vector<2xf32>
    %22 = vector.shape_cast %21 : vector<2xf32> to vector<2x1xf32>
    %23 = math.log %22 : vector<2x1xf32>
    %24 = arith.addf %17, %23 : vector<2x1xf32>
    %25 = tpu.iota {dimensions = array<i32: 1>} : vector<2x40xi32>
    %c32_i32 = arith.constant 32 : i32
    %26 = vector.broadcast %c32_i32 : i32 to vector<2x40xi32>
    %27 = arith.cmpi sge, %25, %26 : vector<2x40xi32>
    %28 = vector.broadcast %24 : vector<2x1xf32> to vector<2x40xf32>
    %29 = arith.subf %13, %28 : vector<2x40xf32>
    %30 = arith.select %27, %29, %13 : vector<2x40xi1>, vector<2x40xf32>
    %c0_14 = arith.constant 0 : index
    %c0_15 = arith.constant 0 : index
    %31 = vector.load %arg8[%c0_14, %c0_15] : memref<2x32xf32, #tpu.memory_space<vmem>>, vector<2x32xf32>
    tpu.vector_store %arg8[%c0_14, %c0_15], %14 {strides = array<i32>} : memref<2x32xf32, #tpu.memory_space<vmem>>, vector<2x32xf32>,
    %c0_16 = arith.constant 0 : index
    %c0_17 = arith.constant 0 : index
    %c0_18 = arith.constant 0 : index
    %32 = vector.load %arg7[%c0_16, %c0_17, %c0_18] : memref<1x2x40xf32, #tpu.memory_space<vmem>>, vector<1x2x40xf32>
    %33 = vector.shape_cast %32 : vector<1x2x40xf32> to vector<2x40xf32>
    %34 = vector.shape_cast %30 : vector<2x40xf32> to vector<1x2x40xf32>
    tpu.vector_store %arg7[%c0_16, %c0_17, %c0_18], %34 {strides = array<i32>} : memref<1x2x40xf32, #tpu.memory_space<vmem>>, vector<1x2x40xf32>,
    return
  }
  func.func @transform_0(%arg0: i32, %arg1: i32) -> (i32, i32, i32) {
    %c0_i32 = arith.constant 0 : i32
    %c0_i32_0 = arith.constant 0 : i32
    return %arg1, %arg0, %c0_i32 : i32, i32, i32
  }
  func.func @transform_1(%arg0: i32, %arg1: i32) -> (i32, i32) {
    %c0_i32 = arith.constant 0 : i32
    %c0_i32_0 = arith.constant 0 : i32
    return %arg0, %c0_i32 : i32, i32
  }
  func.func @transform_2(%arg0: i32, %arg1: i32) -> (i32, i32) {
    %c0_i32 = arith.constant 0 : i32
    %c0_i32_0 = arith.constant 0 : i32
    %c0_i32_1 = arith.constant 0 : i32
    return %c0_i32, %c0_i32_0 : i32, i32
  }
  func.func @transform_3(%arg0: i32, %arg1: i32) -> (i32, i32) {
    %c0_i32 = arith.constant 0 : i32
    %c0_i32_0 = arith.constant 0 : i32
    %c0_i32_1 = arith.constant 0 : i32
    return %c0_i32, %c0_i32_0 : i32, i32
  }
  func.func @transform_4(%arg0: i32, %arg1: i32) -> (i32, i32) {
    %c0_i32 = arith.constant 0 : i32
    %c0_i32_0 = arith.constant 0 : i32
    %c0_i32_1 = arith.constant 0 : i32
    return %c0_i32, %c0_i32_0 : i32, i32
  }
  func.func @transform_5(%arg0: i32, %arg1: i32) -> (i32, i32, i32) {
    %c0_i32 = arith.constant 0 : i32
    %c0_i32_0 = arith.constant 0 : i32
    return %arg1, %arg0, %c0_i32 : i32, i32, i32
  }
}

</mosaic_0001>

<bundles_post_ra>
// kernel: rnn_seq_forward.1
= control target key start
LH: loop header
LB: loop body
LE: loop exit
PB: predicated region body
PF: predicated region fallthrough
CT: control target
= control target key end

     0   :  { %10 = vsyncpa [#allocation4], 0  ;;  %s994_s0 = inlined_call_operand.hbm [shape: f32[8,2,16], index: 0, kind: input, shape index: {}]   ;;  %s995_s1 = inlined_call_operand.hbm [shape: f32[2,32], index: 1, kind: input, shape index: {}]   ;;  %s996_s2 = inlined_call_operand.hbm [shape: f32[16,40], index: 2, kind: input, shape index: {}]   ;;  %s997_s3 = inlined_call_operand.hbm [shape: f32[32,40], index: 3, kind: input, shape index: {}]   ;;  %s998_s4 = inlined_call_operand.vmem [shape: f32[1,40], index: 4, kind: input, shape index: {}]   ;;  %s999_s5 = inlined_call_operand.vmem [shape: f32[8,2,40], index: 5, kind: output, shape index: {}]  }
   0x1   :  { %12 = vsyncpa [#allocation4 + $0x1], 0 }
   0x2   :  { %13 = vsyncpa [#allocation6], 0 }
   0x3   :  { %14 = vsyncpa [#allocation9], 0  ;;  %s860_s18 = smov 0   ;;  %s862_s19 = smov 0  }
   0x4   :  { %s864_s20 = smov 0   ;;  %s866_s21 = smov 0  }
   0x5   :  { %s868_s22 = smov 0   ;;  %s870_s23 = smov 0  }
   0x6 LB: > { %s530_s24 = sadd.s32 4294967295, %s822_s23   ;;  %p54_p0 = scmp.ne.s32.totalorder %s806_s19, %s802_s18  ;;  %s822_s23 = sphi %s870_s23, %s20_s23   ;;  %s818_s22 = sphi %s868_s22, %s1008_s22   ;;  %s814_s21 = sphi %s866_s21, %s1007_s21   ;;  %s810_s20 = sphi %s864_s20, %s1006_s20   ;;  %s806_s19 = sphi %s862_s19, %s1005_s19   ;;  %s802_s18 = sphi %s860_s18, %s1004_s18  }
   0x7   : > { %p890_p1 = scmp.eq.s32.totalorder %s530_s24, 0  ;;  %p532_p2 = scmp.ge.s32.totalorder %s822_s23, 1 }
   0x8   : > { %p182_p3 = scmp.lt.s32.totalorder %s822_s23, 9  ;;  %s196_s29 = sshll.u32 %s995_s1, 4  ;;  %s197_s29 = int_to_ptr.hbm [resolvable:$true] %s196_s29 }
   0x9   : > { %p898_p4 = por %p890_p1, %p54_p0  ;;  %s824_s6 = smov [#allocation5]  }
   0xa   : > { %p905_p5 = pnand %p532_p2, %p182_p3  ;;  %s198_s7 = sshll.u32 %s824_s6, 4  ;;  %s199_s7 = int_to_ptr.vmem [resolvable:$true] %s198_s7 }
   0xb   : > { %s207_s10 = sshll.u32 %s996_s2, 4  ;;  %s825_s12 = smov [#allocation7]   ;;  %s208_s10 = int_to_ptr.hbm [resolvable:$true] %s207_s10 }
   0xc   : > { %p564_p6 = pneg %p905_p5  ;;  %s209_s13 = sshll.u32 %s825_s12, 4  ;;  %s210_s13 = int_to_ptr.vmem [resolvable:$true] %s209_s13 }
   0xd   : > { %s826_s14 = smov 128   ;;  %s827_s15 = smov 8  }
   0xe   : > { %p916_p7 = pnand %p564_p6, %p890_p1  ;;  %s221_s18 = sshll.u32 %s997_s3, 4  ;;  %s222_s18 = int_to_ptr.hbm [resolvable:$true] %s221_s18 }
   0xf   : > { %s828_s24 = smov [#allocation8]   ;;  %s41_s28 = sadd.s32 1, %s810_s20 }
  0x10   : > { %567 = dma.hbm_to_vmem [thread:$0]  (!%p916_p7), %s197_s29, 32, %s199_s7, [#allocation6]  }
  0x11   : > { %570 = dma.hbm_to_vmem [thread:$0]  (!%p916_p7), %s208_s10, 256, %s210_s13, [#allocation6], %s826_s14, %s826_s14, %s827_s15  }
  0x12   : > { %s223_s27 = sshll.u32 %s828_s24, 4  ;;  %s29_s29 = sadd.s32 1, %s818_s22  ;;  %s224_s27 = int_to_ptr.vmem [resolvable:$true] %s223_s27 }
  0x13   : > { %573 = dma.hbm_to_vmem [thread:$0]  (!%p916_p7), %s222_s18, 512, %s224_s27, [#allocation9], %s826_s14, %s826_s14, %s827_s15  }
  0x14   : > { %p48_p8 = scmp.ne.s32.totalorder %s810_s20, %s806_s19  ;;  %p30_p9 = scmp.ge.s32.totalorder %s29_s29, 8 }
  0x15   : > { %p49_p10 = scmp.eq.s32.totalorder %s822_s23, 0  ;;  %p581_p11 = scmp.lt.s32.totalorder %s822_s23, 8 }
  0x16   : > { %s240_s6 = sand.u32 1, %s810_s20   ;;  %s1010_s29 = smov (%p30_p9, %s29_s29), 0 }
  0x17   : > { %p50_p12 = por %p49_p10, %p48_p8  ;;  %s36_s7 = ssub.s32 %s818_s22, %s1010_s29 }
  0x18   : > { %s537_s8 = sshll.u32 %s240_s6, 1  ;;  %p39_p13 = scmp.eq.s32.totalorder %s36_s7, 0 }
  0x19   : > { %s538_s9 = sshll.u32 %s818_s22, 1  ;;  %s244_s10 = scalar_lea.vmem [#allocation3], %s537_s8 }
  0x1a   : > { %s253_s11 = sshll.u32 %s244_s10, 4  ;;  %s249_s15 = scalar_lea.hbm %s994_s0, %s538_s9  ;;  %s254_s11 = int_to_ptr.vmem [resolvable:$true] %s253_s11 }
  0x1b   : > { %s942_s12 = scalar_select %p39_p13, %s810_s20, %s41_s28  }
  0x1c   : > { %s251_s16 = sshll.u32 %s249_s15, 4  ;;  %p575_p0 = pnand %p581_p11, %p50_p12  ;;  %s252_s16 = int_to_ptr.hbm [resolvable:$true] %s251_s16 }
  0x1d   : > { %s241_s17 = scalar_lea.sflag [#allocation4], %s240_s6  ;;  %262 = sbr.rel (%p905_p5) target bundleno = 562 (0x232), region = 40 }
  0x1e   : > { %577 = dma.hbm_to_vmem [thread:$0]  (!%p575_p0), %s252_s16, 32, %s254_s11, %s241_s17  }
  0x1f   : > { %s264_s18 = sand.u32 (!%p905_p5), 1, %s806_s19  }
  0x20   : > { %s540_s24 = sshll.u32 (!%p905_p5), %s264_s18, 1  ;;  %s265_s27 = scalar_lea.sflag (!%p905_p5), [#allocation4], %s264_s18 }
  0x21   : > { %s268_s28 = scalar_lea.vmem (!%p905_p5), [#allocation3], %s540_s24 }
  0x22   : > { %789 = dma.done.wait (%p898_p4), %s265_s27, 32  }
  0x23   : > { %791 = vsyncadd (%p898_p4), %s265_s27, 4294967264 }
  0x24   : > { %793 = dma.done.wait (%p890_p1), [#allocation6], 288  }
  0x25   : > { %795 = vsyncadd (%p890_p1), [#allocation6], 4294967008 }
  0x26   : > { %797 = dma.done.wait (%p890_p1), [#allocation9], 512  }
  0x27   : > { %799 = vsyncadd (%p890_p1), [#allocation9], 4294966784  ;;  %p313_p2 = scmp.lt.s32.totalorder %s814_s21, 7  ;;  %p545_p3 = scmp.ne.s32.totalorder %s814_s21, 0 }
  0x29   : > { %s314_s30 = scalar_select %p313_p2, %s814_s21, 7 }
  0x2a   : > { %323 = sbr.rel (%p545_p3) target bundleno = 49 (0x31), region = 60 }
  0x2b   : > { %s544_s6 = sshll.u32 %s314_s30, 1 }
  0x2c   : > { %s969_s8 = scalar_lea.vmem %s999_s5, %s544_s6 }
  0x2f   : > { %v324_v0 = vld [vmem:[#allocation5] sm:$0x3]  ;;  %vm325_vm0 = vcmask 254976  }
  0x30   : > { %326 = vst.msk [vmem:[#allocation2] sm:$0x3] %vm325_vm0, %v324_v0 }
  0x31 PF: > { %v334_v1 = vld [vmem:[#allocation8 + $0x18] sm:$0xff]  ;;  %v333_v2 = vld [vmem:[#allocation8 + $0x10] sm:$0xff]  ;;  %v332_v5 = vld [vmem:[#allocation8 + $0x8] sm:$0xff]  ;;  %vm359_vm1 = vcmask 130048   ;;  %vm335_vm2 = vcmask 261120   ;;  %vm411_vm3 = vcmask 254976   ;;  %v406_v22 = vlaneseq }
  0x32   : > { %351 = vmatpush.msra.mxu0 %v334_v1  ;;  %v330_v3 = vld [vmem:[#allocation7 + $0x8] sm:$0xff]  ;;  %v329_v4 = vld [vmem:[#allocation7] sm:$0xff]  ;;  %v327_v6 = vld [vmem:[%s268_s28] sm:$0x3]  ;;  %vm388_vm4 = vcmask 320768   ;;  %s829_s9 = smov 96  }
  0x33   : > { %377 = vmatpush.msra.mxu1 %v330_v3  ;;  %v331_v7 = vld [vmem:[#allocation8] sm:$0xff]  ;;  %v639_v10 = vld [vmem:[%s998_s4] ss:$0 sm:$0xff]  ;;  %vm399_vm5 = vcmask 58368   ;;  %v407_v24 = vand.u32 127, %v406_v22  ;;  %vm413_vm7 = vcmask 320512  }
  0x34   : > { %352 = vmatpush.msra.mxu0 %v333_v2 }
  0x35   : > { %378 = vmatpush.msra.mxu1 %v329_v4  ;;  %vm408_vm6 = vcmp.ge.s32.totalorder %v407_v24, 32 }
  0x36   : > { %353 = vmatpush.msra.mxu0 %v332_v5  ;;  %547 = vmatmul.msk.f32.vlgmr.msra.gmra.mxu1 %vm359_vm1, %v327_v6 }
  0x37   : > { %v328_v8 = vld [vmem:[#allocation2] sm:$0x3] }
  0x38   : > { %354 = vmatpush.msra.mxu0 %v331_v7 }
  0x39   : > { %546 = vmatmul.msk.f32.vlgmr.msra.gmra.mxu0 %vm335_vm2, %v328_v8 }
  0xb3   : > { %v380_v9 = vpop.f32.mrf.mxu1 }
  0xb6   : > { %v356_v11 = vpop.f32.mrf.mxu0 }
  0xb7   : > { %v381_v12 = vadd.f32 %v380_v9, %v356_v11 }
  0xb9   : > { %v387_v13 = vadd.f32 %v639_v10, %v381_v12 }
  0xbb   : > { %412 = vst.msk [vmem:[#allocation2] sm:$0x3] %vm411_vm3, %v387_v13  ;;  %v389_v14 = vsel %vm388_vm4, %v387_v13, -inf }
  0xbc   : > { %390 = vmax.xlane.f32.xlu0 %v389_v14 }
 0x12f   : > { %v391_v15 = vpop.xlane.xlu0 %390 }
 0x130   : > { %v392_v16 = vsub.f32 %v387_v13, %v391_v15 }
 0x132   : > { %v393_v17 = vmul.f32 1.442695, %v392_v16 }
 0x134   : > { %640 = vpow2.f32 %v393_v17 }
 0x13a   : > { %v641_v18 = vpop.eup %640 }
 0x13b   : > { %396 = vrot.lane.b32.xlu0 %v641_v18, %s829_s9 }
 0x1ad   : > { %v397_v19 = vpop.permute.xlu0 %396 }
 0x1ae   : > { %v400_v20 = vsel %vm399_vm5, %v397_v19, 0.0 }
 0x1af   : > { %401 = vadd.xlane.f32.xlu1 %v400_v20 }
 0x222   : > { %v402_v21 = vpop.xlane.xlu1 %401 }
 0x223   : > { %642 = vlog2.f32 %v402_v21 }
 0x229   : > { %v643_v23 = vpop.eup %642 }
 0x22a   : > { %v404_v25 = vmul.f32 0.6931472, %v643_v23 }
 0x22c   : > { %v405_v26 = vadd.f32 %v404_v25, %v391_v15 }
 0x22e   : > { %v409_v27 = vsub.f32 %v387_v13, %v405_v26 }
 0x230   : > { %v410_v28 = vsel %vm408_vm6, %v409_v27, %v387_v13 }
 0x231   : > { %414 = vst.msk [vmem:[%s969_s8] sm:$0x3] %vm413_vm7, %v410_v28 }
 0x232 PF: > { %s20_s23 = sadd.s32 1, %s822_s23   ;;  %s1004_s18 = smov %s806_s19 }
 0x233   : > { %p17_p1 = scmp.ge.s32.totalorder %s20_s23, 10   ;;  %s1005_s19 = smov %s810_s20 }
 0x234   : > { %s1006_s20 = smov %s942_s12  ;;  %s1007_s21 = smov %s818_s22 }
 0x235   : > { %s1008_s22 = smov %s1010_s29  ;;  %19 = sbr.rel (!%p17_p1) target bundleno = 6 (0x6), region = 97 }
 0x23a   :  { %440 = vsyncpa [#allocation4], 1 }
 0x23b   :  { %442 = vsyncpa [#allocation4 + $0x1], 1 }
 0x23c   :  { %443 = vsyncpa [#allocation6], 1 }
 0x23d   :  { %444 = vsyncpa [#allocation9], 1 }

</bundles_post_ra>
